<compile_context>
chip_gen: v5e
topology: v5e:2x2
jax: 0.10.0
libtpu: 0.0.40
codegen_flags: <defaults>
</compile_context>

<pallas_src>
import math

import jax
import jax.numpy as jnp
from jax.experimental import pallas as pl
from jax.experimental.pallas import tpu as pltpu


def _round_up(x, m):
    return ((x + m - 1) // m) * m


def _fused_mlp_kernel(x_ref, w_ref, b_ref, o_ref, act_a, act_b):
    """Whole MLP for one batch tile; intermediates never leave VMEM.

    x_ref: (tb, Dmax)            input batch tile
    w_ref: (L, Dmax, Dmax)       padded, stacked weights (resident across grid)
    b_ref: (L, 1, Dmax)          padded, stacked biases  (resident across grid)
    o_ref: (tb, Dmax)            lane-dense output tile
    act_a, act_b: VMEM f32 ping-pong activation buffers, shape (tb, Dmax)
    """
    num_layers = w_ref.shape[0]

    # Load the input tile into the first activation buffer (f32 elementwise path).
    act_a[...] = x_ref[...].astype(jnp.float32)

    bufs = (act_a, act_b)
    cur = 0
    for layer in range(num_layers):  # static, unrolled (L is small & known)
        a = bufs[cur][...]
        # MXU matmul; operands take the weight dtype (f32 or bf16), accumulate f32.
        y = jnp.dot(a.astype(w_ref.dtype), w_ref[layer],
                    preferred_element_type=jnp.float32)
        # Bias add + ReLU stay in f32 on the VPU (safe on v5e as well).
        y = y + b_ref[layer].astype(jnp.float32)
        bufs[1 - cur][...] = jnp.maximum(y, 0.0)
        cur = 1 - cur

    o_ref[...] = bufs[cur][...].astype(o_ref.dtype)


def init_params(layer_sizes, key):
    """Xavier-uniform weights (as in nn.init.xavier_uniform_), zero biases."""
    params = []
    for in_size, out_size in zip(layer_sizes[:-1], layer_sizes[1:]):
        key, sub = jax.random.split(key)
        limit = math.sqrt(6.0 / (in_size + out_size))
        # Stored as (in, out) == PyTorch weight (out, in) transposed.
        w = jax.random.uniform(
            sub, (in_size, out_size), minval=-limit, maxval=limit,
            dtype=jnp.float32)
        b = jnp.zeros((out_size,), dtype=jnp.float32)
        params.append((w, b))
    return params


def base_network_forward(x, params, *, compute_dtype=jnp.float32,
                         interpret=False):
    """Equivalent to BaseNetwork.forward: net(x) if layer_sizes else x.

    `compute_dtype=jnp.bfloat16` casts the MXU operands (weights + activations
    fed to the dot) to bf16 while keeping f32 accumulation / bias / ReLU — the
    recommended setting for large layers on v6e/v7x.
    """
    if not params:
        return x

    B, d_in = x.shape
    assert params[0][0].shape[0] == d_in
    sizes = [d_in] + [w.shape[1] for w, _ in params]
    num_layers = len(params)
    d_out_true = sizes[-1]

    # Lane-dense common width: every feature dim padded up to a multiple of 128.
    d_max = _round_up(max(sizes), 128)

    # Batch tile: small batches become one (8-aligned) tile; large batches are
    # tiled at 256 rows so the grid axis can be sharded across TensorCores.
    if B <= 256:
        tb = _round_up(B, 8)
        b_pad = tb
    else:
        tb = 256
        b_pad = _round_up(B, tb)
    grid = (b_pad // tb,)

    # --- Pack weights/biases: zero-pad each layer into a (Dmax, Dmax) slab ---
    # Zero padding is exactly neutral: padded input columns hit zero weight
    # rows, padded output columns get 0 + 0 bias -> ReLU -> 0.
    w_stack = jnp.zeros((num_layers, d_max, d_max), dtype=compute_dtype)
    b_stack = jnp.zeros((num_layers, 1, d_max), dtype=jnp.float32)
    for l, (w, b) in enumerate(params):
        di, do = w.shape
        w_stack = w_stack.at[l, :di, :do].set(w.astype(compute_dtype))
        b_stack = b_stack.at[l, 0, :do].set(b.astype(jnp.float32))

    x_pad = jnp.zeros((b_pad, d_max), dtype=x.dtype)
    x_pad = x_pad.at[:B, :d_in].set(x)

    # --- VMEM budget (double-buffered inputs/outputs + ping-pong scratch) ---
    xbytes = x.dtype.itemsize
    wbytes = jnp.dtype(compute_dtype).itemsize
    vmem_needed = (
        2 * (tb * d_max * xbytes                    # x tile
             + num_layers * d_max * d_max * wbytes  # resident weights
             + num_layers * d_max * 4               # resident biases
             + tb * d_max * xbytes)                 # out tile
        + 2 * tb * d_max * 4)                       # ping-pong activations
    if vmem_needed > 56 * 1024 * 1024:
        # TODO(synk): add a K/N-tiled grid path (f32 VMEM accumulator,
        # reduction axis last) for layer widths too large to keep resident.
        raise ValueError(
            f"Layer sizes too large for the fused resident-weight kernel "
            f"({vmem_needed} bytes of VMEM needed).")
    vmem_limit = int(min(64 * 1024 * 1024, max(4 * 1024 * 1024, 2 * vmem_needed)))

    cost = pl.CostEstimate(
        flops=int(2 * b_pad * d_max * d_max * num_layers),
        transcendentals=0,
        bytes_accessed=int(b_pad * d_max * xbytes            # x in
                           + num_layers * d_max * d_max * wbytes
                           + num_layers * d_max * 4
                           + b_pad * d_max * xbytes))        # out

    out_pad = pl.pallas_call(
        _fused_mlp_kernel,
        out_shape=jax.ShapeDtypeStruct((b_pad, d_max), x.dtype),
        grid_spec=pltpu.PrefetchScalarGridSpec(
            num_scalar_prefetch=0,
            grid=grid,
            in_specs=[
                # Activations: one batch tile per grid step.
                pl.BlockSpec((tb, d_max), lambda i: (i, 0)),
                # Weights/biases: index_map independent of the batch index, so
                # they stay resident and are not re-DMA'd per batch tile.
                pl.BlockSpec((num_layers, d_max, d_max), lambda i: (0, 0, 0)),
                pl.BlockSpec((num_layers, 1, d_max), lambda i: (0, 0, 0)),
            ],
            out_specs=pl.BlockSpec((tb, d_max), lambda i: (i, 0)),
            scratch_shapes=[pltpu.VMEM((tb, d_max), jnp.float32),
                            pltpu.VMEM((tb, d_max), jnp.float32)],
        ),
        compiler_params=pltpu.CompilerParams(
            dimension_semantics=("parallel",),   # batch axis -> megacore/2-TC
            vmem_limit_bytes=vmem_limit,
        ),
        cost_estimate=cost,
        interpret=interpret,
    )(x_pad, w_stack, b_stack)

    # Slice the lane/sublane padding back off.
    return out_pad[:B, :d_out_true]


if __name__ == "__main__":
    key = jax.random.PRNGKey(0)
    layer_sizes = [32, 64, 16]      # e.g. BaseNetwork(layer_sizes=[32, 64, 16])
    batch = 8

    key, kx = jax.random.split(key)
    x = jax.random.normal(kx, (batch, layer_sizes[0]), dtype=jnp.float32)

    params = init_params(layer_sizes, key)

    out = base_network_forward(x, params)   # f32 everywhere for exact parity
    out = jax.block_until_ready(out)

    # Sanity check against plain-JAX reference of the same forward.
    ref = x
    for w, b in params:
        ref = jnp.maximum(ref @ w + b, 0.0)
    assert out.shape == (batch, layer_sizes[-1])
    assert jnp.allclose(out, ref, atol=1e-5, rtol=1e-5), float(
        jnp.max(jnp.abs(out - ref)))

    # Identity path: BaseNetwork(layer_sizes=None).forward(x) == x.
    ident = base_network_forward(x, [])
    assert jnp.allclose(ident, x)

    print("KERNEL_OK")
</pallas_src>

<mosaic_0001>
module attributes {stable_mosaic.version = 11 : i64} {
  func.func @_fused_mlp_kernel(%arg0: i32, %arg1: memref<8x128xf32, #tpu.memory_space<vmem>>, %arg2: memref<2x128x128xf32, #tpu.memory_space<vmem>>, %arg3: memref<2x1x128xf32, #tpu.memory_space<vmem>>, %arg4: memref<8x128xf32, #tpu.memory_space<vmem>>, %arg5: memref<8x128xf32, #tpu.memory_space<vmem>>, %arg6: memref<8x128xf32, #tpu.memory_space<vmem>>) attributes {dimension_semantics = [#tpu.dimension_semantics<parallel>], iteration_bounds = array<i64: 1>, scalar_prefetch = 0 : i64, scratch_operands = 2 : i64, tpu.core_type = #tpu.core_type<tc>, window_params = [{transform_indices = @transform_0, window_bounds = array<i64: 8, 128>}, {pipeline_mode = #tpu.pipeline_mode<synchronous>, transform_indices = @transform_1, window_bounds = array<i64: 2, 128, 128>}, {pipeline_mode = #tpu.pipeline_mode<synchronous>, transform_indices = @transform_2, window_bounds = array<i64: 2, 1, 128>}, {transform_indices = @transform_3, window_bounds = array<i64: 8, 128>}]} {
    %c0 = arith.constant 0 : index
    %c0_0 = arith.constant 0 : index
    %0 = vector.load %arg1[%c0, %c0_0] : memref<8x128xf32, #tpu.memory_space<vmem>>, vector<8x128xf32>
    %c0_1 = arith.constant 0 : index
    %c0_2 = arith.constant 0 : index
    %1 = vector.load %arg5[%c0_1, %c0_2] : memref<8x128xf32, #tpu.memory_space<vmem>>, vector<8x128xf32>
    tpu.vector_store %arg5[%c0_1, %c0_2], %0 {strides = array<i32>} : memref<8x128xf32, #tpu.memory_space<vmem>>, vector<8x128xf32>,
    %c0_3 = arith.constant 0 : index
    %c0_4 = arith.constant 0 : index
    %2 = vector.load %arg5[%c0_3, %c0_4] : memref<8x128xf32, #tpu.memory_space<vmem>>, vector<8x128xf32>
    %c0_5 = arith.constant 0 : index
    %c0_6 = arith.constant 0 : index
    %c0_7 = arith.constant 0 : index
    %3 = vector.load %arg2[%c0_5, %c0_6, %c0_7] : memref<2x128x128xf32, #tpu.memory_space<vmem>>, vector<1x128x128xf32>
    %4 = vector.shape_cast %3 : vector<1x128x128xf32> to vector<128x128xf32>
    %cst = arith.constant dense<0.000000e+00> : vector<8x128xf32>
    %5 = tpu.matmul %2, %4, %cst {dimension_numbers = #tpu.dot_dimension_numbers<[1], [0], [0], [1], [0, 0, 1, 1], [], []>} : vector<8x128xf32>, vector<128x128xf32>, vector<8x128xf32> -> vector<8x128xf32>
    %c0_8 = arith.constant 0 : index
    %c0_9 = arith.constant 0 : index
    %c0_10 = arith.constant 0 : index
    %6 = vector.load %arg3[%c0_8, %c0_9, %c0_10] : memref<2x1x128xf32, #tpu.memory_space<vmem>>, vector<1x1x128xf32>
    %7 = vector.shape_cast %6 : vector<1x1x128xf32> to vector<1x128xf32>
    %8 = vector.broadcast %7 : vector<1x128xf32> to vector<8x128xf32>
    %9 = arith.addf %5, %8 : vector<8x128xf32>
    %cst_11 = arith.constant 0.000000e+00 : f32
    %10 = vector.broadcast %cst_11 : f32 to vector<8x128xf32>
    %11 = arith.maximumf %9, %10 : vector<8x128xf32>
    %c0_12 = arith.constant 0 : index
    %c0_13 = arith.constant 0 : index
    %12 = vector.load %arg6[%c0_12, %c0_13] : memref<8x128xf32, #tpu.memory_space<vmem>>, vector<8x128xf32>
    tpu.vector_store %arg6[%c0_12, %c0_13], %11 {strides = array<i32>} : memref<8x128xf32, #tpu.memory_space<vmem>>, vector<8x128xf32>,
    %c0_14 = arith.constant 0 : index
    %c0_15 = arith.constant 0 : index
    %13 = vector.load %arg6[%c0_14, %c0_15] : memref<8x128xf32, #tpu.memory_space<vmem>>, vector<8x128xf32>
    %c1 = arith.constant 1 : index
    %c0_16 = arith.constant 0 : index
    %c0_17 = arith.constant 0 : index
    %14 = vector.load %arg2[%c1, %c0_16, %c0_17] : memref<2x128x128xf32, #tpu.memory_space<vmem>>, vector<1x128x128xf32>
    %15 = vector.shape_cast %14 : vector<1x128x128xf32> to vector<128x128xf32>
    %cst_18 = arith.constant dense<0.000000e+00> : vector<8x128xf32>
    %16 = tpu.matmul %13, %15, %cst_18 {dimension_numbers = #tpu.dot_dimension_numbers<[1], [0], [0], [1], [0, 0, 1, 1], [], []>} : vector<8x128xf32>, vector<128x128xf32>, vector<8x128xf32> -> vector<8x128xf32>
    %c1_19 = arith.constant 1 : index
    %c0_20 = arith.constant 0 : index
    %c0_21 = arith.constant 0 : index
    %17 = vector.load %arg3[%c1_19, %c0_20, %c0_21] : memref<2x1x128xf32, #tpu.memory_space<vmem>>, vector<1x1x128xf32>
    %18 = vector.shape_cast %17 : vector<1x1x128xf32> to vector<1x128xf32>
    %19 = vector.broadcast %18 : vector<1x128xf32> to vector<8x128xf32>
    %20 = arith.addf %16, %19 : vector<8x128xf32>
    %cst_22 = arith.constant 0.000000e+00 : f32
    %21 = vector.broadcast %cst_22 : f32 to vector<8x128xf32>
    %22 = arith.maximumf %20, %21 : vector<8x128xf32>
    %c0_23 = arith.constant 0 : index
    %c0_24 = arith.constant 0 : index
    %23 = vector.load %arg5[%c0_23, %c0_24] : memref<8x128xf32, #tpu.memory_space<vmem>>, vector<8x128xf32>
    tpu.vector_store %arg5[%c0_23, %c0_24], %22 {strides = array<i32>} : memref<8x128xf32, #tpu.memory_space<vmem>>, vector<8x128xf32>,
    %c0_25 = arith.constant 0 : index
    %c0_26 = arith.constant 0 : index
    %24 = vector.load %arg5[%c0_25, %c0_26] : memref<8x128xf32, #tpu.memory_space<vmem>>, vector<8x128xf32>
    %c0_27 = arith.constant 0 : index
    %c0_28 = arith.constant 0 : index
    %25 = vector.load %arg4[%c0_27, %c0_28] : memref<8x128xf32, #tpu.memory_space<vmem>>, vector<8x128xf32>
    tpu.vector_store %arg4[%c0_27, %c0_28], %24 {strides = array<i32>} : memref<8x128xf32, #tpu.memory_space<vmem>>, vector<8x128xf32>,
    return
  }
  func.func @transform_0(%arg0: i32) -> (i32, i32) {
    %c0_i32 = arith.constant 0 : i32
    %c0_i32_0 = arith.constant 0 : i32
    return %arg0, %c0_i32 : i32, i32
  }
  func.func @transform_1(%arg0: i32) -> (i32, i32, i32) {
    %c0_i32 = arith.constant 0 : i32
    %c0_i32_0 = arith.constant 0 : i32
    %c0_i32_1 = arith.constant 0 : i32
    %c0_i32_2 = arith.constant 0 : i32
    return %c0_i32, %c0_i32_0, %c0_i32_1 : i32, i32, i32
  }
  func.func @transform_2(%arg0: i32) -> (i32, i32, i32) {
    %c0_i32 = arith.constant 0 : i32
    %c0_i32_0 = arith.constant 0 : i32
    %c0_i32_1 = arith.constant 0 : i32
    %c0_i32_2 = arith.constant 0 : i32
    return %c0_i32, %c0_i32_0, %c0_i32_1 : i32, i32, i32
  }
  func.func @transform_3(%arg0: i32) -> (i32, i32) {
    %c0_i32 = arith.constant 0 : i32
    %c0_i32_0 = arith.constant 0 : i32
    return %arg0, %c0_i32 : i32, i32
  }
}

</mosaic_0001>

<bundles_post_ra>
// kernel: tpu_custom_call.1
= control target key start
LH: loop header
LB: loop body
LE: loop exit
PB: predicated region body
PF: predicated region fallthrough
CT: control target
= control target key end

     0   :  { %8 = vsyncpa [#allocation5], 0  ;;  %s322_s0 = inlined_call_operand.hbm [shape: f32[8,128], index: 0, kind: input, shape index: {}]   ;;  %s323_s1 = inlined_call_operand.hbm [shape: f32[2,128,128], index: 1, kind: input, shape index: {}]   ;;  %s324_s2 = inlined_call_operand.hbm [shape: f32[2,1,128], index: 2, kind: input, shape index: {}]   ;;  %s325_s3 = inlined_call_operand.hbm [shape: f32[8,128], index: 3, kind: output, shape index: {}]  }
   0x1   :  { %9 = vsyncpa [#allocation8], 0  ;;  %s26_s14 = sshll.u32 %s323_s1, 4  ;;  %s27_s14 = int_to_ptr.hbm [resolvable:$true] %s26_s14 }
   0x2   :  { %10 = vsyncpa [#allocation6], 0  ;;  %s282_s15 = smov [#allocation7]   ;;  %s16_s19 = sshll.u32 %s322_s0, 4  ;;  %s17_s19 = int_to_ptr.hbm [resolvable:$true] %s16_s19 }
   0x3   :  { %s28_s16 = sshll.u32 %s282_s15, 4  ;;  %s283_s20 = smov 128   ;;  %s29_s16 = int_to_ptr.vmem [resolvable:$true] %s28_s16 }
   0x4   :  { %s284_s21 = smov 8   ;;  %s285_s22 = smov [#allocation4]  }
   0x5   :  { %34 = dma.hbm_to_vmem [thread:$0]  %s27_s14, 4096, %s29_s16, [#allocation8], %s283_s20, %s283_s20, %s284_s21  }
   0x6   :  { %s18_s23 = sshll.u32 %s285_s22, 4  ;;  %s39_s26 = sshll.u32 %s324_s2, 4  ;;  %s19_s23 = int_to_ptr.vmem [resolvable:$true] %s18_s23  ;;  %s40_s26 = int_to_ptr.hbm [resolvable:$true] %s39_s26 }
   0x7   :  { %21 = dma.hbm_to_vmem [thread:$0]  %s17_s19, 128, %s19_s23, [#allocation5]  }
   0x8   :  { %s286_s1 = smov [#allocation9]   ;;  %s287_s28 = smov 16  }
   0x9   :  { %s41_s27 = sshll.u32 %s286_s1, 4  ;;  %s288_s29 = smov 1   ;;  %s42_s27 = int_to_ptr.vmem [resolvable:$true] %s41_s27 }
   0xa   :  { %47 = dma.hbm_to_vmem [thread:$0]  %s40_s26, 32, %s42_s27, [#allocation8], %s287_s28, %s287_s28, %s288_s29  }
   0xb   :  { %276 = dma.done.wait [#allocation5], 128  }
   0xc   :  { %277 = vsyncadd [#allocation5], 4294967168 }
   0xd   :  { %278 = dma.done.wait [#allocation8], 4128  }
   0xe   :  { %279 = vsyncadd [#allocation8], 4294963168  ;;  %v78_v0 = vld [vmem:[#allocation7 + $0x78] sm:$0xff]  ;;  %v77_v1 = vld [vmem:[#allocation7 + $0x70] sm:$0xff]  ;;  %s289_s0 = smov [#allocation10]   ;;  %s159_s5 = sshll.u32 %s325_s3, 4  ;;  %s160_s5 = int_to_ptr.hbm [resolvable:$true] %s159_s5 }
   0xf   :  { %83 = vmatpush.msra.mxu0 %v78_v0  ;;  %v76_v2 = vld [vmem:[#allocation7 + $0x68] sm:$0xff]  ;;  %v75_v3 = vld [vmem:[#allocation7 + $0x60] sm:$0xff]  ;;  %v122_v4 = vld [vmem:[#allocation7 + $0xf8] sm:$0xff]  ;;  %s157_s2 = sshll.u32 %s289_s0, 4  ;;  %s158_s2 = int_to_ptr.vmem [resolvable:$true] %s157_s2 }
  0x10   :  { %v74_v5 = vld [vmem:[#allocation7 + $0x58] sm:$0xff]  ;;  %128 = vmatpush.msra.mxu1 %v122_v4  ;;  %v121_v6 = vld [vmem:[#allocation7 + $0xf0] sm:$0xff]  ;;  %v120_v7 = vld [vmem:[#allocation7 + $0xe8] sm:$0xff] }
  0x11   :  { %84 = vmatpush.msra.mxu0 %v77_v1  ;;  %v73_v8 = vld [vmem:[#allocation7 + $0x50] sm:$0xff]  ;;  %v119_v9 = vld [vmem:[#allocation7 + $0xe0] sm:$0xff]  ;;  %v72_v10 = vld [vmem:[#allocation7 + $0x48] sm:$0xff] }
  0x12   :  { %129 = vmatpush.msra.mxu1 %v121_v6  ;;  %v118_v11 = vld [vmem:[#allocation7 + $0xd8] sm:$0xff]  ;;  %v71_v12 = vld [vmem:[#allocation7 + $0x40] sm:$0xff]  ;;  %v117_v13 = vld [vmem:[#allocation7 + $0xd0] sm:$0xff] }
  0x13   :  { %85 = vmatpush.msra.mxu0 %v76_v2  ;;  %v70_v14 = vld [vmem:[#allocation7 + $0x38] sm:$0xff]  ;;  %v116_v15 = vld [vmem:[#allocation7 + $0xc8] sm:$0xff]  ;;  %v69_v16 = vld [vmem:[#allocation7 + $0x30] sm:$0xff] }
  0x14   :  { %130 = vmatpush.msra.mxu1 %v120_v7  ;;  %v115_v17 = vld [vmem:[#allocation7 + $0xc0] sm:$0xff]  ;;  %v68_v18 = vld [vmem:[#allocation7 + $0x28] sm:$0xff]  ;;  %v114_v19 = vld [vmem:[#allocation7 + $0xb8] sm:$0xff] }
  0x15   :  { %86 = vmatpush.msra.mxu0 %v75_v3  ;;  %v67_v20 = vld [vmem:[#allocation7 + $0x20] sm:$0xff]  ;;  %v113_v21 = vld [vmem:[#allocation7 + $0xb0] sm:$0xff]  ;;  %v66_v22 = vld [vmem:[#allocation7 + $0x18] sm:$0xff] }
  0x16   :  { %131 = vmatpush.msra.mxu1 %v119_v9  ;;  %v112_v23 = vld [vmem:[#allocation7 + $0xa8] sm:$0xff]  ;;  %v65_v24 = vld [vmem:[#allocation7 + $0x10] sm:$0xff]  ;;  %v111_v25 = vld [vmem:[#allocation7 + $0xa0] sm:$0xff] }
  0x17   :  { %87 = vmatpush.msra.mxu0 %v74_v5  ;;  %v64_v26 = vld [vmem:[#allocation7 + $0x8] sm:$0xff]  ;;  %v110_v27 = vld [vmem:[#allocation7 + $0x98] sm:$0xff]  ;;  %v63_v28 = vld [vmem:[#allocation7] sm:$0xff] }
  0x18   :  { %132 = vmatpush.msra.mxu1 %v118_v11  ;;  %v60_v29 = vld [vmem:[#allocation4] sm:$0xff]  ;;  %v109_v30 = vld [vmem:[#allocation7 + $0x90] sm:$0xff]  ;;  %v108_v31 = vld [vmem:[#allocation7 + $0x88] sm:$0xff] }
  0x19   :  { %88 = vmatpush.msra.mxu0 %v73_v8  ;;  %v107_v32 = vld [vmem:[#allocation7 + $0x80] sm:$0xff] }
  0x1a   :  { %133 = vmatpush.msra.mxu1 %v117_v13  ;;  %v178_v33 = vld [vmem:[#allocation9] ss:$0 sm:$0xff]  ;;  %v179_v37 = vld [vmem:[#allocation9 + $0x1] ss:$0 sm:$0xff] }
  0x1b   :  { %89 = vmatpush.msra.mxu0 %v72_v10 }
  0x1c   :  { %134 = vmatpush.msra.mxu1 %v116_v15 }
  0x1d   :  { %90 = vmatpush.msra.mxu0 %v71_v12 }
  0x1e   :  { %135 = vmatpush.msra.mxu1 %v115_v17 }
  0x1f   :  { %91 = vmatpush.msra.mxu0 %v70_v14 }
  0x20   :  { %136 = vmatpush.msra.mxu1 %v114_v19 }
  0x21   :  { %92 = vmatpush.msra.mxu0 %v69_v16 }
  0x22   :  { %137 = vmatpush.msra.mxu1 %v113_v21 }
  0x23   :  { %93 = vmatpush.msra.mxu0 %v68_v18 }
  0x24   :  { %138 = vmatpush.msra.mxu1 %v112_v23 }
  0x25   :  { %94 = vmatpush.msra.mxu0 %v67_v20 }
  0x26   :  { %139 = vmatpush.msra.mxu1 %v111_v25 }
  0x27   :  { %95 = vmatpush.msra.mxu0 %v66_v22 }
  0x28   :  { %140 = vmatpush.msra.mxu1 %v110_v27 }
  0x29   :  { %96 = vmatpush.msra.mxu0 %v65_v24 }
  0x2a   :  { %141 = vmatpush.msra.mxu1 %v109_v30 }
  0x2b   :  { %97 = vmatpush.msra.mxu0 %v64_v26 }
  0x2c   :  { %142 = vmatpush.msra.mxu1 %v108_v31 }
  0x2d   :  { %98 = vmatpush.msra.mxu0 %v63_v28 }
  0x2e   :  { %99 = vmatmul.f32.vlgmr.msra.gmra.mxu0 %v60_v29  ;;  %143 = vmatpush.msra.mxu1 %v107_v32 }
  0xab   :  { %v100_v34 = vpop.f32.mrf.mxu0 }
  0xac   :  { %v101_v35 = vadd.f32 %v178_v33, %v100_v34 }
  0xae   :  { %v103_v36 = vmax.f32 %v101_v35, 0.0 }
  0xb0   :  { %144 = vmatmul.f32.vlgmr.msra.gmra.mxu1 %v103_v36 }
 0x12d   :  { %v145_v38 = vpop.f32.mrf.mxu1 }
 0x12e   :  { %v146_v39 = vadd.f32 %v179_v37, %v145_v38 }
 0x130   :  { %v148_v40 = vmax.f32 %v146_v39, 0.0 }
 0x132   :  { %151 = vst [vmem:[#allocation10] sm:$0xff] %v148_v40 }
 0x133   :  { %162 = dma.vmem_to_hbm [thread:$0]  %s158_s2, 128, %s160_s5, [#allocation6]  }
 0x134   :  { %280 = dma.done.wait [#allocation6], 128  }
 0x135   :  { %281 = vsyncadd [#allocation6], 4294967168 }
 0x136   :  { %167 = vsyncpa [#allocation5], 1 }
 0x137   :  { %168 = vsyncpa [#allocation8], 1 }
 0x138   :  { %169 = vsyncpa [#allocation6], 1 }

</bundles_post_ra>
